<compile_context>
chip_gen: v7x
topology: tpu7x:2x2x1
jax: 0.10.0
libtpu: 0.0.40
codegen_flags: <defaults>
</compile_context>

<pallas_src>
import functools

import jax
import jax.numpy as jnp
from jax.experimental import pallas as pl
from jax.experimental.pallas import tpu as pltpu

NEG_BIG = -1.0e30  # bias for padded action sublanes: exp(NEG_BIG - m) == 0 in f32


def _round_up(x, m):
    return ((x + m - 1) // m) * m


def actor_kernel(xt_ref, w1t_ref, b1t_ref, w2t_ref, b2t_ref, w3t_ref, b3t_ref,
                 ot_ref):
    """Tanh MLP + log_softmax on one (obs_dim, TB) transposed batch tile.

    Everything is f32; batch is on the lane axis, features on sublanes.
    """
    xt = xt_ref[...]                                           # (obs_dim, TB)

    # Hidden layer 1: h1^T = W1^T @ x^T + b1^T ; tanh
    h = jnp.dot(w1t_ref[...], xt, preferred_element_type=jnp.float32)
    h = jnp.tanh(h + b1t_ref[...])                             # (H1, TB)

    # Hidden layer 2
    h = jnp.dot(w2t_ref[...], h, preferred_element_type=jnp.float32)
    h = jnp.tanh(h + b2t_ref[...])                             # (H2, TB)

    # Action head (padded to a multiple of 8 sublanes; padded rows ~ -1e30)
    logits = jnp.dot(w3t_ref[...], h, preferred_element_type=jnp.float32)
    logits = logits + b3t_ref[...]                             # (A_pad, TB)

    # Numerically stable log_softmax over the action (sublane) axis.
    m = jnp.max(logits, axis=0, keepdims=True)                 # (1, TB)
    z = logits - m
    lse = jnp.log(jnp.sum(jnp.exp(z), axis=0, keepdims=True))  # (1, TB)
    ot_ref[...] = (z - lse).astype(ot_ref.dtype)


def prepare_params(w1, b1, w2, b2, w3, b3):
    """One-time prep: transpose to the batch-on-lanes layout, pad the action
    head to a multiple of 8 sublanes (zero weight rows, -1e30 bias), all f32."""
    n_actions = w3.shape[1]
    n_pad = _round_up(max(n_actions, 8), 8)
    pad = n_pad - n_actions
    w3p = jnp.pad(w3, ((0, 0), (0, pad)))                      # (H2, A_pad)
    b3p = jnp.pad(b3, ((0, 0), (0, pad)), constant_values=NEG_BIG)  # (1, A_pad)
    return (
        w1.T.astype(jnp.float32),   # (H1, obs_dim)
        b1.T.astype(jnp.float32),   # (H1, 1)
        w2.T.astype(jnp.float32),   # (H2, H1)
        b2.T.astype(jnp.float32),   # (H2, 1)
        w3p.T.astype(jnp.float32),  # (A_pad, H2)
        b3p.T.astype(jnp.float32),  # (A_pad, 1)
    )


@functools.partial(jax.jit, static_argnames=("n_actions", "block_b"))
def actor_forward(x, params, *, n_actions, block_b=None):
    """x: (B, obs_dim) float32 -> (B, n_actions) float32 log-probabilities."""
    B, obs_dim = x.shape
    w1t, b1t, w2t, b2t, w3t, b3t = params
    n_pad = w3t.shape[0]

    # Batch tile on the lane axis: multiple of 128; default = whole (padded)
    # batch up to 2048 so small/medium rollouts are a single grid step.
    if block_b is None:
        block_b = min(2048, _round_up(B, 128))
    block_b = _round_up(block_b, 128)
    bp = _round_up(B, block_b)

    # Transposed input (obs_dim, bp); padded batch columns are zero-filled
    # garbage that is sliced off below.
    xt = x.T
    if bp != B:
        xt = jnp.pad(xt, ((0, 0), (0, bp - B)))

    grid = (bp // block_b,)
    # Weights/biases: whole-array, VMEM-resident, no per-step DMA.
    resident = pl.BlockSpec(memory_space=pltpu.MemorySpace.VMEM)

    out_t = pl.pallas_call(
        actor_kernel,
        out_shape=jax.ShapeDtypeStruct((n_pad, bp), jnp.float32),
        grid=grid,
        in_specs=[
            pl.BlockSpec((obs_dim, block_b), lambda i: (0, i)),  # x^T tiles
            resident, resident,   # w1^T, b1^T
            resident, resident,   # w2^T, b2^T
            resident, resident,   # w3^T (padded), b3^T (padded)
        ],
        out_specs=pl.BlockSpec((n_pad, block_b), lambda i: (0, i)),
        compiler_params=pltpu.CompilerParams(
            dimension_semantics=("parallel",)),
    )(xt, w1t, b1t, w2t, b2t, w3t, b3t)

    # (A_pad, bp) -> (B, n_actions)
    return out_t[:n_actions, :B].T


def init_linear(key, fan_in, fan_out):
    """PyTorch-style uniform(-1/sqrt(fan_in), 1/sqrt(fan_in)) init."""
    kw, kb = jax.random.split(key)
    bound = 1.0 / jnp.sqrt(float(fan_in))
    w = jax.random.uniform(kw, (fan_in, fan_out), jnp.float32, -bound, bound)
    b = jax.random.uniform(kb, (1, fan_out), jnp.float32, -bound, bound)
    return w, b


def reference_forward(x, w1, b1, w2, b2, w3, b3):
    """Pure-JAX f32 reference of Actor.forward."""
    h = jnp.tanh(x @ w1 + b1)
    h = jnp.tanh(h @ w2 + b2)
    return jax.nn.log_softmax(h @ w3 + b3, axis=1)


if __name__ == "__main__":
    # Env-like shapes: obs_dim=16, hidden_sizes=[32, 32], n_actions=8.
    obs_dim, hidden1, hidden2, n_actions = 16, 32, 32, 8

    key = jax.random.PRNGKey(0)
    k_obs, k1, k2, k3 = jax.random.split(key, 4)

    w1, b1 = init_linear(k1, obs_dim, hidden1)
    w2, b2 = init_linear(k2, hidden1, hidden2)
    w3, b3 = init_linear(k3, hidden2, n_actions)
    params = prepare_params(w1, b1, w2, b2, w3, b3)

    # Batched rollout of observations (amortizes launch + weight DMA; single
    # grid step at this size).
    B = 256
    x = jax.random.normal(k_obs, (B, obs_dim), jnp.float32)

    log_probs = actor_forward(x, params, n_actions=n_actions)
    log_probs = jax.block_until_ready(log_probs)
    assert log_probs.shape == (B, n_actions)

    # Check vs. f32 reference (all-f32 pipeline -> tight tolerance).
    ref = reference_forward(x, w1, b1, w2, b2, w3, b3)
    max_err = float(jnp.max(jnp.abs(log_probs - ref)))
    assert max_err < 1e-2, f"mismatch vs f32 reference (max abs err {max_err})"
    # log-probs must normalize: sum(exp(log_probs)) == 1
    assert jnp.allclose(jnp.sum(jnp.exp(log_probs), axis=1), 1.0, atol=1e-4)

    # Original Actor.forward semantics: a single observation (batch of 1).
    lp1 = actor_forward(x[:1], params, n_actions=n_actions)
    lp1 = jax.block_until_ready(lp1)
    assert lp1.shape == (1, n_actions)
    assert jnp.allclose(lp1, log_probs[:1], atol=1e-5)

    print("KERNEL_OK")
</pallas_src>

<mosaic_0001>
module attributes {stable_mosaic.version = 11 : i64} {
  func.func @actor_kernel(%arg0: i32, %arg1: memref<16x256xf32, #tpu.memory_space<vmem>>, %arg2: memref<32x16xf32, #tpu.memory_space<vmem>>, %arg3: memref<32x1xf32, #tpu.memory_space<vmem>>, %arg4: memref<32x32xf32, #tpu.memory_space<vmem>>, %arg5: memref<32x1xf32, #tpu.memory_space<vmem>>, %arg6: memref<8x32xf32, #tpu.memory_space<vmem>>, %arg7: memref<8x1xf32, #tpu.memory_space<vmem>>, %arg8: memref<8x256xf32, #tpu.memory_space<vmem>>) attributes {dimension_semantics = [#tpu.dimension_semantics<parallel>], iteration_bounds = array<i64: 1>, scalar_prefetch = 0 : i64, scratch_operands = 0 : i64, tpu.core_type = #tpu.core_type<tc>, window_params = [{transform_indices = @transform_0, window_bounds = array<i64: 16, 256>}, {pipeline_mode = #tpu.pipeline_mode<synchronous>, transform_indices = @transform_1, window_bounds = array<i64: 32, 16>}, {pipeline_mode = #tpu.pipeline_mode<synchronous>, transform_indices = @transform_2, window_bounds = array<i64: 32, 1>}, {pipeline_mode = #tpu.pipeline_mode<synchronous>, transform_indices = @transform_3, window_bounds = array<i64: 32, 32>}, {pipeline_mode = #tpu.pipeline_mode<synchronous>, transform_indices = @transform_4, window_bounds = array<i64: 32, 1>}, {pipeline_mode = #tpu.pipeline_mode<synchronous>, transform_indices = @transform_5, window_bounds = array<i64: 8, 32>}, {pipeline_mode = #tpu.pipeline_mode<synchronous>, transform_indices = @transform_6, window_bounds = array<i64: 8, 1>}, {transform_indices = @transform_7, window_bounds = array<i64: 8, 256>}]} {
    %c0 = arith.constant 0 : index
    %c0_0 = arith.constant 0 : index
    %0 = vector.load %arg1[%c0, %c0_0] : memref<16x256xf32, #tpu.memory_space<vmem>>, vector<16x256xf32>
    %c0_1 = arith.constant 0 : index
    %c0_2 = arith.constant 0 : index
    %1 = vector.load %arg2[%c0_1, %c0_2] : memref<32x16xf32, #tpu.memory_space<vmem>>, vector<32x16xf32>
    %cst = arith.constant dense<0.000000e+00> : vector<32x256xf32>
    %2 = tpu.matmul %1, %0, %cst {dimension_numbers = #tpu.dot_dimension_numbers<[1], [0], [0], [1], [0, 0, 1, 1], [], []>} : vector<32x16xf32>, vector<16x256xf32>, vector<32x256xf32> -> vector<32x256xf32>
    %c0_3 = arith.constant 0 : index
    %c0_4 = arith.constant 0 : index
    %3 = vector.load %arg3[%c0_3, %c0_4] : memref<32x1xf32, #tpu.memory_space<vmem>>, vector<32x1xf32>
    %4 = vector.broadcast %3 : vector<32x1xf32> to vector<32x256xf32>
    %5 = arith.addf %2, %4 : vector<32x256xf32>
    %6 = math.tanh %5 : vector<32x256xf32>
    %c0_5 = arith.constant 0 : index
    %c0_6 = arith.constant 0 : index
    %7 = vector.load %arg4[%c0_5, %c0_6] : memref<32x32xf32, #tpu.memory_space<vmem>>, vector<32x32xf32>
    %cst_7 = arith.constant dense<0.000000e+00> : vector<32x256xf32>
    %8 = tpu.matmul %7, %6, %cst_7 {dimension_numbers = #tpu.dot_dimension_numbers<[1], [0], [0], [1], [0, 0, 1, 1], [], []>} : vector<32x32xf32>, vector<32x256xf32>, vector<32x256xf32> -> vector<32x256xf32>
    %c0_8 = arith.constant 0 : index
    %c0_9 = arith.constant 0 : index
    %9 = vector.load %arg5[%c0_8, %c0_9] : memref<32x1xf32, #tpu.memory_space<vmem>>, vector<32x1xf32>
    %10 = vector.broadcast %9 : vector<32x1xf32> to vector<32x256xf32>
    %11 = arith.addf %8, %10 : vector<32x256xf32>
    %12 = math.tanh %11 : vector<32x256xf32>
    %c0_10 = arith.constant 0 : index
    %c0_11 = arith.constant 0 : index
    %13 = vector.load %arg6[%c0_10, %c0_11] : memref<8x32xf32, #tpu.memory_space<vmem>>, vector<8x32xf32>
    %cst_12 = arith.constant dense<0.000000e+00> : vector<8x256xf32>
    %14 = tpu.matmul %13, %12, %cst_12 {dimension_numbers = #tpu.dot_dimension_numbers<[1], [0], [0], [1], [0, 0, 1, 1], [], []>} : vector<8x32xf32>, vector<32x256xf32>, vector<8x256xf32> -> vector<8x256xf32>
    %c0_13 = arith.constant 0 : index
    %c0_14 = arith.constant 0 : index
    %15 = vector.load %arg7[%c0_13, %c0_14] : memref<8x1xf32, #tpu.memory_space<vmem>>, vector<8x1xf32>
    %16 = vector.broadcast %15 : vector<8x1xf32> to vector<8x256xf32>
    %17 = arith.addf %14, %16 : vector<8x256xf32>
    %cst_15 = arith.constant dense<0xFF800000> : vector<256xf32>
    %18 = vector.multi_reduction <maximumf>, %17, %cst_15 [0] : vector<8x256xf32> to vector<256xf32>
    %19 = vector.shape_cast %18 : vector<256xf32> to vector<1x256xf32>
    %20 = vector.broadcast %19 : vector<1x256xf32> to vector<8x256xf32>
    %21 = arith.subf %17, %20 : vector<8x256xf32>
    %22 = math.exp %21 : vector<8x256xf32>
    %cst_16 = arith.constant dense<0.000000e+00> : vector<256xf32>
    %23 = vector.multi_reduction <add>, %22, %cst_16 [0] : vector<8x256xf32> to vector<256xf32>
    %24 = vector.shape_cast %23 : vector<256xf32> to vector<1x256xf32>
    %25 = math.log %24 : vector<1x256xf32>
    %26 = vector.broadcast %25 : vector<1x256xf32> to vector<8x256xf32>
    %27 = arith.subf %21, %26 : vector<8x256xf32>
    %c0_17 = arith.constant 0 : index
    %c0_18 = arith.constant 0 : index
    %28 = vector.load %arg8[%c0_17, %c0_18] : memref<8x256xf32, #tpu.memory_space<vmem>>, vector<8x256xf32>
    tpu.vector_store %arg8[%c0_17, %c0_18], %27 {strides = array<i32>} : memref<8x256xf32, #tpu.memory_space<vmem>>, vector<8x256xf32>,
    return
  }
  func.func @transform_0(%arg0: i32) -> (i32, i32) {
    %c0_i32 = arith.constant 0 : i32
    %c0_i32_0 = arith.constant 0 : i32
    return %c0_i32, %arg0 : i32, i32
  }
  func.func @transform_1(%arg0: i32) -> (i32, i32) {
    %c0_i32 = arith.constant 0 : i32
    %c0_i32_0 = arith.constant 0 : i32
    %c0_i32_1 = arith.constant 0 : i32
    return %c0_i32, %c0_i32_0 : i32, i32
  }
  func.func @transform_2(%arg0: i32) -> (i32, i32) {
    %c0_i32 = arith.constant 0 : i32
    %c0_i32_0 = arith.constant 0 : i32
    %c0_i32_1 = arith.constant 0 : i32
    return %c0_i32, %c0_i32_0 : i32, i32
  }
  func.func @transform_3(%arg0: i32) -> (i32, i32) {
    %c0_i32 = arith.constant 0 : i32
    %c0_i32_0 = arith.constant 0 : i32
    %c0_i32_1 = arith.constant 0 : i32
    return %c0_i32, %c0_i32_0 : i32, i32
  }
  func.func @transform_4(%arg0: i32) -> (i32, i32) {
    %c0_i32 = arith.constant 0 : i32
    %c0_i32_0 = arith.constant 0 : i32
    %c0_i32_1 = arith.constant 0 : i32
    return %c0_i32, %c0_i32_0 : i32, i32
  }
  func.func @transform_5(%arg0: i32) -> (i32, i32) {
    %c0_i32 = arith.constant 0 : i32
    %c0_i32_0 = arith.constant 0 : i32
    %c0_i32_1 = arith.constant 0 : i32
    return %c0_i32, %c0_i32_0 : i32, i32
  }
  func.func @transform_6(%arg0: i32) -> (i32, i32) {
    %c0_i32 = arith.constant 0 : i32
    %c0_i32_0 = arith.constant 0 : i32
    %c0_i32_1 = arith.constant 0 : i32
    return %c0_i32, %c0_i32_0 : i32, i32
  }
  func.func @transform_7(%arg0: i32) -> (i32, i32) {
    %c0_i32 = arith.constant 0 : i32
    %c0_i32_0 = arith.constant 0 : i32
    return %c0_i32, %arg0 : i32, i32
  }
}

</mosaic_0001>

<bundles_post_ra>
// kernel: actor_forward.1
= control target key start
LH: loop header
LB: loop body
LE: loop exit
PB: predicated region body
PF: predicated region fallthrough
CT: control target
= control target key end

     0   :  { %v538_v5 = vmov 0.0   ;;  %v539_v6 = vmov 0   ;;  %vm59_vm0 = vcmask 130048   ;;  %s677_s0 = inlined_call_operand.vmem [shape: f32[16,256], index: 0, kind: input, shape index: {}]   ;;  %s678_s1 = inlined_call_operand.vmem [shape: f32[32,16], index: 1, kind: input, shape index: {}]   ;;  %s679_s2 = inlined_call_operand.vmem [shape: f32[32,1], index: 2, kind: input, shape index: {}]   ;;  %s680_s3 = inlined_call_operand.vmem [shape: f32[32,32], index: 3, kind: input, shape index: {}]   ;;  %s681_s4 = inlined_call_operand.vmem [shape: f32[32,1], index: 4, kind: input, shape index: {}]   ;;  %s682_s5 = inlined_call_operand.vmem [shape: f32[8,32], index: 5, kind: input, shape index: {}]   ;;  %s683_s6 = inlined_call_operand.vmem [shape: f32[8,1], index: 6, kind: input, shape index: {}]   ;;  %s684_s7 = inlined_call_operand.hbm [shape: f32[8,256], index: 7, kind: output, shape index: {}]  }
   0x1   :  { %v28_v0 = vld [vmem:[%s677_s0 + $0x8] sm:$0xff]  ;;  %v30_v1 = vld [vmem:[%s677_s0 + $0x18] sm:$0xff]  ;;  %v27_v2 = vld [vmem:[%s677_s0] sm:$0xff]  ;;  %136 = vmatprep.mubr.f32.mxu0 %v538_v5  ;;  %472 = vset.pattern.permute.xlu0 %v539_v6 }
   0x2   :  { %v449_v3 = vpack.c.bf16 %v30_v1, %v28_v0  ;;  %v29_v4 = vld [vmem:[%s677_s0 + $0x10] sm:$0xff]  ;;  %v35_v8 = vld [vmem:[%s679_s2] sm:$0xff]  ;;  %473 = vset.pattern.permute.xlu1 %v539_v6  ;;  %274 = vmatprep.mubr.f32.mxu1 %v538_v5  ;;  %v36_v11 = vld [vmem:[%s679_s2 + $0x8] sm:$0xff] }
   0x3   :  { %v451_v7 = vpack.c.bf16 %v29_v4, %v27_v2  ;;  %41 = vperm.xlu0 %472, %v35_v8   ;;  %v37_v9 = vld [vmem:[%s679_s2 + $0x10] sm:$0xff]  ;;  %v31_v10 = vld [vmem:[%s678_s1] sm:$0xff]  ;;  %v38_v12 = vld [vmem:[%s679_s2 + $0x18] sm:$0xff] }
   0x4   :  { %450 = vmatprep.subr.bf16.mxu0 %v449_v3  ;;  %51 = vperm.xlu1 %473, %v37_v9  }
   0x5   :  { %452 = vmatpush1.bf16.msra.mxu0 %v451_v7 }
   0x6   :  { %12 = vsyncpa [#allocation3], 0  ;;  %v32_v13 = vld [vmem:[%s678_s1 + $0x8] sm:$0xff]  ;;  %v173_v14 = vld [vmem:[%s681_s4] sm:$0xff]  ;;  %vm197_vm1 = vcmask 261120  }
   0x7   :  { %46 = vperm.xlu0 %472, %v36_v11   ;;  %v174_v15 = vld [vmem:[%s681_s4 + $0x8] sm:$0xff]  ;;  %v33_v16 = vld [vmem:[%s678_s1 + $0x10] sm:$0xff]  ;;  %v176_v18 = vld [vmem:[%s681_s4 + $0x18] sm:$0xff] }
   0x8   :  { %440 = vmatmul.mubr.msk.f32.vlgmr.msra.gmra.mrb[0].mxu0 %vm59_vm0, %v31_v10  ;;  %56 = vperm.xlu1 %473, %v38_v12   ;;  %v175_v17 = vld [vmem:[%s681_s4 + $0x10] sm:$0xff]  ;;  %v34_v19 = vld [vmem:[%s678_s1 + $0x18] sm:$0xff]  ;;  %v308_v20 = vld [vmem:[%s683_s6] sm:$0xff] }
   0x9   :  { %142 = vmatprep.mubr.f32.mxu0 %v538_v5  ;;  %v169_v53 = vld [vmem:[%s680_s3] sm:$0xff]  ;;  %v170_v54 = vld [vmem:[%s680_s3 + $0x8] sm:$0xff]  ;;  %v171_v55 = vld [vmem:[%s680_s3 + $0x10] sm:$0xff] }
   0xa   :  { %v172_v56 = vld [vmem:[%s680_s3 + $0x18] sm:$0xff] }
   0xb   :  { %179 = vperm.xlu0 %472, %v173_v14  }
   0xc   :  { %441 = vmatmul.mubr.msk.f32.gmra.mrb[2].mxu0 %vm59_vm0, %v32_v13  ;;  %184 = vperm.xlu1 %473, %v174_v15  }
   0xd   :  { %148 = vmatprep.mubr.f32.mxu0 %v538_v5 }
   0xf   :  { %189 = vperm.xlu0 %472, %v175_v17  }
  0x10   :  { %442 = vmatmul.mubr.msk.f32.gmra.mrb[4].mxu0 %vm59_vm0, %v33_v16  ;;  %194 = vperm.xlu1 %473, %v176_v18  }
  0x11   :  { %154 = vmatprep.mubr.f32.mxu0 %v538_v5 }
  0x13   :  { %311 = vperm.xlu0 %472, %v308_v20  }
  0x14   :  { %443 = vmatmul.mubr.msk.f32.gmra.mrb[6].mxu0 %vm59_vm0, %v34_v19 }
  0x15   :  { %381 = vmatprep.mubr.f32.mxu0 %v538_v5 }
  0x82   :  { %v42_v21 = vpop.permute.xlu0 %41 }
  0x83   :  { %v52_v30 = vpop.permute.xlu1 %51 }
  0x86   :  { %v47_v26 = vpop.permute.xlu0 %46 }
  0x87   :  { %v57_v36 = vpop.permute.xlu1 %56 }
  0x8a   :  { %v180_v57 = vpop.permute.xlu0 %179 }
  0x8b   :  { %v185_v62 = vpop.permute.xlu1 %184 }
  0x8e   :  { %v190_v3 = vpop.permute.xlu0 %189 }
  0x8f   :  { %v195_v8 = vpop.permute.xlu1 %194 }
  0xdb   :  { %v138_v22 = vpop.f32.mrb[0].mxu0 }
  0xdc   :  { %v139_v23 = vadd.f32 %v138_v22, %v42_v21  ;;  %v140_v24 = vpop.f32.mrb[1].mxu0 }
  0xdd   :  { %v141_v25 = vadd.f32 %v140_v24, %v42_v21 }
  0xde   :  { %474 = vtanh.f32 %v139_v23 }
  0xdf   :  { %v144_v27 = vpop.f32.mrb[2].mxu0  ;;  %476 = vtanh.f32 %v141_v25  ;;  %v307_v25 = vld [vmem:[%s682_s5] sm:$0xff]  ;;  %s540_s5 = smov [#allocation2]  }
  0xe0   :  { %v145_v28 = vadd.f32 %v144_v27, %v47_v26  ;;  %v146_v29 = vpop.f32.mrb[3].mxu0  ;;  %s432_s15 = sshll.u32 %s540_s5, 4  ;;  %s433_s15 = int_to_ptr.vmem [resolvable:$true] %s432_s15 }
  0xe1   :  { %v147_v31 = vadd.f32 %v146_v29, %v47_v26  ;;  %v312_v26 = vpop.permute.xlu0 %311  ;;  %s514_s16 = scalar_lea.vmem %s433_s15, 256  ;;  %p519_p1 = scmp.lt.s32.totalorder %s433_s15, %s433_s15 }
  0xe2   :  { %478 = vtanh.f32 %v145_v28  ;;  %p515_p0 = scmp.ne.s32.totalorder %s433_s15, %s514_s16  ;;  %p520_p2 = scmp.lt.s32.totalorder %s514_s16, %s514_s16 }
  0xe3   :  { %480 = vtanh.f32 %v147_v31  ;;  %v150_v32 = vpop.f32.mrb[4].mxu0 }
  0xe4   :  { %v151_v33 = vadd.f32 %v150_v32, %v52_v30  ;;  %v152_v34 = vpop.f32.mrb[5].mxu0  ;;  %p521_p3 = por %p520_p2, %p519_p1 }
  0xe5   :  { %v153_v35 = vadd.f32 %v152_v34, %v52_v30 }
  0xe6   :  { %482 = vtanh.f32 %v151_v33  ;;  %p522_p4 = pnand %p521_p3, %p515_p0 }
  0xe7   :  { %v156_v37 = vpop.f32.mrb[6].mxu0  ;;  %484 = vtanh.f32 %v153_v35 }
  0xe8   :  { %v157_v38 = vadd.f32 %v156_v37, %v57_v36  ;;  %v158_v39 = vpop.f32.mrb[7].mxu0  ;;  %v475_v41 = vpop.eup %474 }
  0xe9   :  { %v159_v40 = vadd.f32 %v158_v39, %v57_v36  ;;  %v477_v42 = vpop.eup %476 }
  0xea   :  { %486 = vtanh.f32 %v157_v38 }
  0xeb   :  { %488 = vtanh.f32 %v159_v40 }
  0xec   :  { %v479_v43 = vpop.eup %478 }
  0xed   :  { %v481_v44 = vpop.eup %480  ;;  %v455_v45 = vpack.c.bf16 %v479_v43, %v475_v41 }
  0xee   :  { %v453_v46 = vpack.c.bf16 %v481_v44, %v477_v42 }
  0xf0   :  { %454 = vmatprep.subr.bf16.mxu1 %v453_v46  ;;  %v483_v47 = vpop.eup %482 }
  0xf1   :  { %456 = vmatpush1.bf16.msra.mxu1 %v455_v45  ;;  %v485_v48 = vpop.eup %484 }
  0xf4   :  { %v487_v49 = vpop.eup %486 }
  0xf5   :  { %v489_v50 = vpop.eup %488  ;;  %v459_v51 = vpack.c.bf16 %v487_v49, %v483_v47 }
  0xf6   :  { %v457_v52 = vpack.c.bf16 %v489_v50, %v485_v48 }
  0xf8   :  { %458 = vmatprep.subr.bf16.mxu1 %v457_v52 }
  0xf9   :  { %460 = vmatpush1.bf16.msra.mxu1 %v459_v51 }
  0xfc   :  { %444 = vmatmul.mubr.msk.f32.vlgmr.msra.gmra.mrb[0].mxu1 %vm197_vm1, %v169_v53 }
  0xfd   :  { %280 = vmatprep.mubr.f32.mxu1 %v538_v5 }
 0x100   :  { %445 = vmatmul.mubr.msk.f32.gmra.mrb[2].mxu1 %vm197_vm1, %v170_v54 }
 0x101   :  { %286 = vmatprep.mubr.f32.mxu1 %v538_v5 }
 0x104   :  { %446 = vmatmul.mubr.msk.f32.gmra.mrb[4].mxu1 %vm197_vm1, %v171_v55 }
 0x105   :  { %292 = vmatprep.mubr.f32.mxu1 %v538_v5 }
 0x108   :  { %447 = vmatmul.mubr.msk.f32.gmra.mrb[6].mxu1 %vm197_vm1, %v172_v56 }
 0x1cf   :  { %v276_v58 = vpop.f32.mrb[0].mxu1 }
 0x1d0   :  { %v277_v59 = vadd.f32 %v276_v58, %v180_v57  ;;  %v278_v60 = vpop.f32.mrb[1].mxu1 }
 0x1d1   :  { %v279_v61 = vadd.f32 %v278_v60, %v180_v57 }
 0x1d2   :  { %490 = vtanh.f32 %v277_v59 }
 0x1d3   :  { %v282_v63 = vpop.f32.mrb[2].mxu1  ;;  %492 = vtanh.f32 %v279_v61 }
 0x1d4   :  { %v283_v0 = vadd.f32 %v282_v63, %v185_v62  ;;  %v284_v1 = vpop.f32.mrb[3].mxu1 }
 0x1d5   :  { %v285_v2 = vadd.f32 %v284_v1, %v185_v62 }
 0x1d6   :  { %494 = vtanh.f32 %v283_v0 }
 0x1d7   :  { %496 = vtanh.f32 %v285_v2  ;;  %v288_v4 = vpop.f32.mrb[4].mxu1 }
 0x1d8   :  { %v289_v5 = vadd.f32 %v288_v4, %v190_v3  ;;  %v290_v6 = vpop.f32.mrb[5].mxu1 }
 0x1d9   :  { %v291_v7 = vadd.f32 %v290_v6, %v190_v3 }
 0x1da   :  { %498 = vtanh.f32 %v289_v5 }
 0x1db   :  { %v294_v9 = vpop.f32.mrb[6].mxu1  ;;  %500 = vtanh.f32 %v291_v7 }
 0x1dc   :  { %v295_v10 = vadd.f32 %v294_v9, %v195_v8  ;;  %v296_v11 = vpop.f32.mrb[7].mxu1  ;;  %v491_v13 = vpop.eup %490 }
 0x1dd   :  { %v297_v12 = vadd.f32 %v296_v11, %v195_v8  ;;  %v493_v14 = vpop.eup %492 }
 0x1de   :  { %502 = vtanh.f32 %v295_v10 }
 0x1df   :  { %504 = vtanh.f32 %v297_v12 }
 0x1e0   :  { %v495_v15 = vpop.eup %494 }
 0x1e1   :  { %v497_v16 = vpop.eup %496  ;;  %v463_v17 = vpack.c.bf16 %v495_v15, %v491_v13 }
 0x1e2   :  { %v461_v18 = vpack.c.bf16 %v497_v16, %v493_v14 }
 0x1e4   :  { %462 = vmatprep.subr.bf16.mxu0 %v461_v18  ;;  %v499_v19 = vpop.eup %498 }
 0x1e5   :  { %464 = vmatpush1.bf16.msra.mxu0 %v463_v17  ;;  %v501_v20 = vpop.eup %500 }
 0x1e8   :  { %v503_v21 = vpop.eup %502 }
 0x1e9   :  { %v505_v22 = vpop.eup %504  ;;  %v467_v23 = vpack.c.bf16 %v503_v21, %v499_v19 }
 0x1ea   :  { %v465_v24 = vpack.c.bf16 %v505_v22, %v501_v20 }
 0x1ec   :  { %466 = vmatprep.subr.bf16.mxu0 %v465_v24 }
 0x1ed   :  { %468 = vmatpush1.bf16.msra.mxu0 %v467_v23 }
 0x1f0   :  { %448 = vmatmul.mubr.msk.f32.vlgmr.msra.gmra.mrb[8].mxu0 %vm197_vm1, %v307_v25 }
 0x2c3   :  { %v383_v27 = vpop.f32.mrb[8].mxu0 }
 0x2c4   :  { %v384_v28 = vadd.f32 %v383_v27, %v312_v26  ;;  %v385_v29 = vpop.f32.mrb[9].mxu0 }
 0x2c5   :  { %v386_v30 = vadd.f32 %v385_v29, %v312_v26 }
 0x2c6   :  { %v388_v31 = vrot.slane %v384_v28, 4 }
 0x2c7   :  { %v394_v32 = vrot.slane %v386_v30, 4 }
 0x2c8   :  { %v389_v33 = vmax.f32 %v384_v28, %v388_v31 }
 0x2c9   :  { %v395_v34 = vmax.f32 %v386_v30, %v394_v32 }
 0x2ca   :  { %v390_v35 = vrot.slane %v389_v33, 2 }
 0x2cb   :  { %v396_v36 = vrot.slane %v395_v34, 2 }
 0x2cc   :  { %v391_v37 = vmax.f32 %v389_v33, %v390_v35 }
 0x2cd   :  { %v397_v38 = vmax.f32 %v395_v34, %v396_v36 }
 0x2ce   :  { %v392_v39 = vrot.slane %v391_v37, 1 }
 0x2cf   :  { %v398_v40 = vrot.slane %v397_v38, 1 }
 0x2d0   :  { %v393_v41 = vmax.f32 %v391_v37, %v392_v39 }
 0x2d1   :  { %v399_v42 = vmax.f32 %v397_v38, %v398_v40 }
 0x2d2   :  { %v400_v43 = vsub.f32 %v384_v28, %v393_v41 }
 0x2d3   :  { %v401_v44 = vsub.f32 %v386_v30, %v399_v42 }
 0x2d4   :  { %v402_v45 = vmul.f32 1.442695, %v400_v43 }
 0x2d5   :  { %v404_v46 = vmul.f32 1.442695, %v401_v44 }
 0x2d6   :  { %506 = vpow2.f32 %v402_v45 }
 0x2d7   :  { %508 = vpow2.f32 %v404_v46 }
 0x2e0   :  { %v507_v47 = vpop.eup %506 }
 0x2e1   :  { %v509_v48 = vpop.eup %508  ;;  %v406_v49 = vrot.slane %v507_v47, 4 }
 0x2e2   :  { %v412_v50 = vrot.slane %v509_v48, 4 }
 0x2e3   :  { %v407_v51 = vadd.f32 %v507_v47, %v406_v49 }
 0x2e4   :  { %v413_v52 = vadd.f32 %v509_v48, %v412_v50 }
 0x2e5   :  { %v408_v53 = vrot.slane %v407_v51, 2 }
 0x2e6   :  { %v414_v54 = vrot.slane %v413_v52, 2 }
 0x2e7   :  { %v409_v55 = vadd.f32 %v408_v53, %v407_v51 }
 0x2e8   :  { %v415_v56 = vadd.f32 %v414_v54, %v413_v52 }
 0x2e9   :  { %v410_v57 = vrot.slane %v409_v55, 1 }
 0x2ea   :  { %v416_v58 = vrot.slane %v415_v56, 1 }
 0x2eb   :  { %v411_v59 = vadd.f32 %v410_v57, %v409_v55 }
 0x2ec   :  { %v417_v60 = vadd.f32 %v416_v58, %v415_v56 }
 0x2ed   :  { %510 = vlog2.f32 %v411_v59 }
 0x2ee   :  { %512 = vlog2.f32 %v417_v60 }
 0x2f7   :  { %v511_v61 = vpop.eup %510 }
 0x2f8   :  { %v513_v62 = vpop.eup %512  ;;  %v419_v63 = vmul.f32 0.6931472, %v511_v61 }
 0x2f9   :  { %v421_v0 = vmul.f32 0.6931472, %v513_v62 }
 0x2fa   :  { %v422_v1 = vsub.f32 %v400_v43, %v419_v63 }
 0x2fb   :  { %v423_v2 = vsub.f32 %v401_v44, %v421_v0 }
 0x2fc   :  { %424 = vst [vmem:[#allocation2] sm:$0xff] %v422_v1 }
 0x2fd   :  { %425 = vst [vmem:[#allocation2 + $0x8] sm:$0xff] %v423_v2 }
 0x2fe   :  { %525 = shalt.err (!%p522_p4)
}
 0x2ff   :  { %s526_s19 = scalar_lea.hbm %s684_s7, 256 }
 0x300   :  { %p527_p5 = scmp.ne.s32.totalorder %s684_s7, %s526_s19  ;;  %p530_p6 = scmp.lt.u32.totalorder %s526_s19, %s684_s7 }
 0x302   :  { %p532_p7 = pnand %p530_p6, %p527_p5 }
 0x304   :  { %535 = shalt.err (!%p532_p7)
}
 0x305   :  { %435 = dma.vmem_to_hbm [thread:$0]  %s433_s15, 256, %s684_s7, [#allocation3]  }
 0x306   :  { %536 = dma.done.wait [#allocation3], 256  }
 0x307   :  { %537 = vsyncadd [#allocation3], 4294967040 }
 0x308   :  { %439 = vsyncpa [#allocation3], 1 }

</bundles_post_ra>
